<compile_context>
chip_gen: v5e
topology: v5e:2x2
jax: 0.10.0
libtpu: 0.0.40
codegen_flags: <defaults>
</compile_context>

<pallas_src>
import functools

import jax
import jax.numpy as jnp
from jax.experimental import pallas as pl
from jax.experimental.pallas import tpu as pltpu


def _residualv2_kernel(p_ref, x0_ref, x1_ref, out_ref, *, hidden):
    """p_ref: (10*H + 8,) f32 in SMEM; x0/x1/out: (tile_r, 128) f32 in VMEM."""
    H = hidden
    x0 = x0_ref[...]                # (tile_r, 128) lane-dense batch slab
    x1 = x1_ref[...]
    m = p_ref[10 * H + 7]           # residual multiplier (scalar from SMEM)

    def mlp_block(x0, x1, base):
        # flat layout: w1 (2,H) row-major | b1 (H,) | w2 (H,2) row-major | b2 (2,)
        w1 = base
        b1 = base + 2 * H
        w2 = base + 3 * H
        b2 = base + 5 * H
        # residual path + output bias
        y0 = p_ref[b2 + 0] + x0 * m
        y1 = p_ref[b2 + 1] + x1 * m
        # unrolled over the (small, static) hidden width: pure VPU FMAs
        for j in range(H):
            h = jnp.maximum(
                p_ref[w1 + j] * x0 + p_ref[w1 + H + j] * x1 + p_ref[b1 + j],
                0.0)
            y0 = y0 + p_ref[w2 + 2 * j + 0] * h
            y1 = y1 + p_ref[w2 + 2 * j + 1] * h
        return y0, y1

    x0, x1 = mlp_block(x0, x1, 0)              # x = main1(x) + x * multiplier
    x0, x1 = mlp_block(x0, x1, 5 * H + 2)      # x = main2(x) + x * multiplier

    # final Linear(2, 1) + sigmoid (exp runs on the EUP slot)
    z = p_ref[10 * H + 4] * x0 + p_ref[10 * H + 5] * x1 + p_ref[10 * H + 6]
    out_ref[...] = jax.nn.sigmoid(z)


@functools.partial(jax.jit, static_argnames=("tile_r",))
def residualv2_forward(x, params, tile_r=64):
    """x: (N, 2) float32 -> (N, 1) float32.  N must be a multiple of 128."""
    (w1a, b1a, w2a, b2a, w1b, b1b, w2b, b2b, w3, b3, mult) = params
    N = x.shape[0]
    H = w1a.shape[1]
    assert N % 128 == 0, "batch must be a multiple of 128 (lane width)"
    R = N // 128
    tile_r = min(tile_r, R)
    assert R % tile_r == 0 and (tile_r % 8 == 0 or tile_r == R)

    # Pack every parameter into one flat f32 vector that lives in SMEM.
    flat = jnp.concatenate([
        w1a.reshape(-1), b1a.reshape(-1), w2a.reshape(-1), b2a.reshape(-1),
        w1b.reshape(-1), b1b.reshape(-1), w2b.reshape(-1), b2b.reshape(-1),
        w3.reshape(-1), b3.reshape(-1), mult.reshape(-1),
    ]).astype(jnp.float32)

    # Layout plumbing in the wrapper: batch on lanes (two lane-dense planes).
    xt = x.astype(jnp.float32).T          # (2, N)
    x0p = xt[0].reshape(R, 128)
    x1p = xt[1].reshape(R, 128)

    kernel = functools.partial(_residualv2_kernel, hidden=H)

    out_plane = pl.pallas_call(
        kernel,
        out_shape=jax.ShapeDtypeStruct((R, 128), jnp.float32),
        grid=(R // tile_r,),
        in_specs=[
            pl.BlockSpec(memory_space=pltpu.MemorySpace.SMEM),   # packed params
            pl.BlockSpec((tile_r, 128), lambda i: (i, 0)),       # x0 plane
            pl.BlockSpec((tile_r, 128), lambda i: (i, 0)),       # x1 plane
        ],
        out_specs=pl.BlockSpec((tile_r, 128), lambda i: (i, 0)),
        compiler_params=pltpu.CompilerParams(
            dimension_semantics=("parallel",)),
    )(flat, x0p, x1p)

    return out_plane.reshape(N, 1)


def init_params(key, num_hidden):
    """Deterministic synthetic parameters (shapes match the PyTorch module)."""
    ks = jax.random.split(key, 10)

    def lin(kw, kb, fan_in, fan_out):
        bound = 1.0 / jnp.sqrt(fan_in)
        w = jax.random.uniform(kw, (fan_in, fan_out), jnp.float32, -bound, bound)
        b = jax.random.uniform(kb, (1, fan_out), jnp.float32, -bound, bound)
        return w, b

    w1a, b1a = lin(ks[0], ks[1], 2, num_hidden)
    w2a, b2a = lin(ks[2], ks[3], num_hidden, 2)
    w1b, b1b = lin(ks[4], ks[5], 2, num_hidden)
    w2b, b2b = lin(ks[6], ks[7], num_hidden, 2)
    w3, b3 = lin(ks[8], ks[9], 2, 1)
    mult = jnp.ones((1, 1), jnp.float32)   # nn.Parameter(torch.FloatTensor([1]))
    return (w1a, b1a, w2a, b2a, w1b, b1b, w2b, b2b, w3, b3, mult)


def reference_forward(x, params):
    (w1a, b1a, w2a, b2a, w1b, b1b, w2b, b2b, w3, b3, mult) = params
    m = mult[0, 0]
    h = jnp.maximum(x @ w1a + b1a, 0.0)
    x = h @ w2a + b2a + x * m
    h = jnp.maximum(x @ w1b + b1b, 0.0)
    x = h @ w2b + b2b + x * m
    z = x @ w3 + b3
    return jax.nn.sigmoid(z)


if __name__ == "__main__":
    key = jax.random.PRNGKey(0)
    k_x, k_p = jax.random.split(key)

    num_hidden = 4          # Residualv2(num_hidden=4); default in the module is 1
    N = 2048                # batch of 2-D points (multiple of 128)
    x = jax.random.normal(k_x, (N, 2), jnp.float32)
    params = init_params(k_p, num_hidden)

    # tile_r=8 -> 1024 points per grid step, 2 grid steps (keeps both v7x TCs busy)
    out = residualv2_forward(x, params, tile_r=8)
    out = jax.block_until_ready(out)

    ref = reference_forward(x, params)
    assert out.shape == (N, 1)
    assert jnp.max(jnp.abs(out - ref)) < 1e-5

    print("KERNEL_OK")
</pallas_src>

<mosaic_0001>
module attributes {stable_mosaic.version = 11 : i64} {
  func.func @_residualv2_kernel(%arg0: i32, %arg1: memref<48xf32, #tpu.memory_space<smem>>, %arg2: memref<8x128xf32, #tpu.memory_space<vmem>>, %arg3: memref<8x128xf32, #tpu.memory_space<vmem>>, %arg4: memref<8x128xf32, #tpu.memory_space<vmem>>) attributes {dimension_semantics = [#tpu.dimension_semantics<parallel>], iteration_bounds = array<i64: 2>, scalar_prefetch = 0 : i64, scratch_operands = 0 : i64, tpu.core_type = #tpu.core_type<tc>, window_params = [{transform_indices = @transform_0, window_bounds = array<i64: 48>}, {transform_indices = @transform_1, window_bounds = array<i64: 8, 128>}, {transform_indices = @transform_2, window_bounds = array<i64: 8, 128>}, {transform_indices = @transform_3, window_bounds = array<i64: 8, 128>}]} {
    %c0 = arith.constant 0 : index
    %c0_0 = arith.constant 0 : index
    %0 = vector.load %arg2[%c0, %c0_0] : memref<8x128xf32, #tpu.memory_space<vmem>>, vector<8x128xf32>
    %c0_1 = arith.constant 0 : index
    %c0_2 = arith.constant 0 : index
    %1 = vector.load %arg3[%c0_1, %c0_2] : memref<8x128xf32, #tpu.memory_space<vmem>>, vector<8x128xf32>
    %c47 = arith.constant 47 : index
    %2 = memref.load %arg1[%c47] : memref<48xf32, #tpu.memory_space<smem>>
    %c20 = arith.constant 20 : index
    %3 = memref.load %arg1[%c20] : memref<48xf32, #tpu.memory_space<smem>>
    %4 = vector.broadcast %2 : f32 to vector<8x128xf32>
    %5 = arith.mulf %0, %4 : vector<8x128xf32>
    %6 = vector.broadcast %3 : f32 to vector<8x128xf32>
    %7 = arith.addf %6, %5 : vector<8x128xf32>
    %c21 = arith.constant 21 : index
    %8 = memref.load %arg1[%c21] : memref<48xf32, #tpu.memory_space<smem>>
    %9 = vector.broadcast %2 : f32 to vector<8x128xf32>
    %10 = arith.mulf %1, %9 : vector<8x128xf32>
    %11 = vector.broadcast %8 : f32 to vector<8x128xf32>
    %12 = arith.addf %11, %10 : vector<8x128xf32>
    %c0_3 = arith.constant 0 : index
    %13 = memref.load %arg1[%c0_3] : memref<48xf32, #tpu.memory_space<smem>>
    %14 = vector.broadcast %13 : f32 to vector<8x128xf32>
    %15 = arith.mulf %14, %0 : vector<8x128xf32>
    %c4 = arith.constant 4 : index
    %16 = memref.load %arg1[%c4] : memref<48xf32, #tpu.memory_space<smem>>
    %17 = vector.broadcast %16 : f32 to vector<8x128xf32>
    %18 = arith.mulf %17, %1 : vector<8x128xf32>
    %19 = arith.addf %15, %18 : vector<8x128xf32>
    %c8 = arith.constant 8 : index
    %20 = memref.load %arg1[%c8] : memref<48xf32, #tpu.memory_space<smem>>
    %21 = vector.broadcast %20 : f32 to vector<8x128xf32>
    %22 = arith.addf %19, %21 : vector<8x128xf32>
    %cst = arith.constant 0.000000e+00 : f32
    %23 = vector.broadcast %cst : f32 to vector<8x128xf32>
    %24 = arith.maximumf %22, %23 : vector<8x128xf32>
    %c12 = arith.constant 12 : index
    %25 = memref.load %arg1[%c12] : memref<48xf32, #tpu.memory_space<smem>>
    %26 = vector.broadcast %25 : f32 to vector<8x128xf32>
    %27 = arith.mulf %26, %24 : vector<8x128xf32>
    %28 = arith.addf %7, %27 : vector<8x128xf32>
    %c13 = arith.constant 13 : index
    %29 = memref.load %arg1[%c13] : memref<48xf32, #tpu.memory_space<smem>>
    %30 = vector.broadcast %29 : f32 to vector<8x128xf32>
    %31 = arith.mulf %30, %24 : vector<8x128xf32>
    %32 = arith.addf %12, %31 : vector<8x128xf32>
    %c1 = arith.constant 1 : index
    %33 = memref.load %arg1[%c1] : memref<48xf32, #tpu.memory_space<smem>>
    %34 = vector.broadcast %33 : f32 to vector<8x128xf32>
    %35 = arith.mulf %34, %0 : vector<8x128xf32>
    %c5 = arith.constant 5 : index
    %36 = memref.load %arg1[%c5] : memref<48xf32, #tpu.memory_space<smem>>
    %37 = vector.broadcast %36 : f32 to vector<8x128xf32>
    %38 = arith.mulf %37, %1 : vector<8x128xf32>
    %39 = arith.addf %35, %38 : vector<8x128xf32>
    %c9 = arith.constant 9 : index
    %40 = memref.load %arg1[%c9] : memref<48xf32, #tpu.memory_space<smem>>
    %41 = vector.broadcast %40 : f32 to vector<8x128xf32>
    %42 = arith.addf %39, %41 : vector<8x128xf32>
    %cst_4 = arith.constant 0.000000e+00 : f32
    %43 = vector.broadcast %cst_4 : f32 to vector<8x128xf32>
    %44 = arith.maximumf %42, %43 : vector<8x128xf32>
    %c14 = arith.constant 14 : index
    %45 = memref.load %arg1[%c14] : memref<48xf32, #tpu.memory_space<smem>>
    %46 = vector.broadcast %45 : f32 to vector<8x128xf32>
    %47 = arith.mulf %46, %44 : vector<8x128xf32>
    %48 = arith.addf %28, %47 : vector<8x128xf32>
    %c15 = arith.constant 15 : index
    %49 = memref.load %arg1[%c15] : memref<48xf32, #tpu.memory_space<smem>>
    %50 = vector.broadcast %49 : f32 to vector<8x128xf32>
    %51 = arith.mulf %50, %44 : vector<8x128xf32>
    %52 = arith.addf %32, %51 : vector<8x128xf32>
    %c2 = arith.constant 2 : index
    %53 = memref.load %arg1[%c2] : memref<48xf32, #tpu.memory_space<smem>>
    %54 = vector.broadcast %53 : f32 to vector<8x128xf32>
    %55 = arith.mulf %54, %0 : vector<8x128xf32>
    %c6 = arith.constant 6 : index
    %56 = memref.load %arg1[%c6] : memref<48xf32, #tpu.memory_space<smem>>
    %57 = vector.broadcast %56 : f32 to vector<8x128xf32>
    %58 = arith.mulf %57, %1 : vector<8x128xf32>
    %59 = arith.addf %55, %58 : vector<8x128xf32>
    %c10 = arith.constant 10 : index
    %60 = memref.load %arg1[%c10] : memref<48xf32, #tpu.memory_space<smem>>
    %61 = vector.broadcast %60 : f32 to vector<8x128xf32>
    %62 = arith.addf %59, %61 : vector<8x128xf32>
    %cst_5 = arith.constant 0.000000e+00 : f32
    %63 = vector.broadcast %cst_5 : f32 to vector<8x128xf32>
    %64 = arith.maximumf %62, %63 : vector<8x128xf32>
    %c16 = arith.constant 16 : index
    %65 = memref.load %arg1[%c16] : memref<48xf32, #tpu.memory_space<smem>>
    %66 = vector.broadcast %65 : f32 to vector<8x128xf32>
    %67 = arith.mulf %66, %64 : vector<8x128xf32>
    %68 = arith.addf %48, %67 : vector<8x128xf32>
    %c17 = arith.constant 17 : index
    %69 = memref.load %arg1[%c17] : memref<48xf32, #tpu.memory_space<smem>>
    %70 = vector.broadcast %69 : f32 to vector<8x128xf32>
    %71 = arith.mulf %70, %64 : vector<8x128xf32>
    %72 = arith.addf %52, %71 : vector<8x128xf32>
    %c3 = arith.constant 3 : index
    %73 = memref.load %arg1[%c3] : memref<48xf32, #tpu.memory_space<smem>>
    %74 = vector.broadcast %73 : f32 to vector<8x128xf32>
    %75 = arith.mulf %74, %0 : vector<8x128xf32>
    %c7 = arith.constant 7 : index
    %76 = memref.load %arg1[%c7] : memref<48xf32, #tpu.memory_space<smem>>
    %77 = vector.broadcast %76 : f32 to vector<8x128xf32>
    %78 = arith.mulf %77, %1 : vector<8x128xf32>
    %79 = arith.addf %75, %78 : vector<8x128xf32>
    %c11 = arith.constant 11 : index
    %80 = memref.load %arg1[%c11] : memref<48xf32, #tpu.memory_space<smem>>
    %81 = vector.broadcast %80 : f32 to vector<8x128xf32>
    %82 = arith.addf %79, %81 : vector<8x128xf32>
    %cst_6 = arith.constant 0.000000e+00 : f32
    %83 = vector.broadcast %cst_6 : f32 to vector<8x128xf32>
    %84 = arith.maximumf %82, %83 : vector<8x128xf32>
    %c18 = arith.constant 18 : index
    %85 = memref.load %arg1[%c18] : memref<48xf32, #tpu.memory_space<smem>>
    %86 = vector.broadcast %85 : f32 to vector<8x128xf32>
    %87 = arith.mulf %86, %84 : vector<8x128xf32>
    %88 = arith.addf %68, %87 : vector<8x128xf32>
    %c19 = arith.constant 19 : index
    %89 = memref.load %arg1[%c19] : memref<48xf32, #tpu.memory_space<smem>>
    %90 = vector.broadcast %89 : f32 to vector<8x128xf32>
    %91 = arith.mulf %90, %84 : vector<8x128xf32>
    %92 = arith.addf %72, %91 : vector<8x128xf32>
    %c42 = arith.constant 42 : index
    %93 = memref.load %arg1[%c42] : memref<48xf32, #tpu.memory_space<smem>>
    %94 = vector.broadcast %2 : f32 to vector<8x128xf32>
    %95 = arith.mulf %88, %94 : vector<8x128xf32>
    %96 = vector.broadcast %93 : f32 to vector<8x128xf32>
    %97 = arith.addf %96, %95 : vector<8x128xf32>
    %c43 = arith.constant 43 : index
    %98 = memref.load %arg1[%c43] : memref<48xf32, #tpu.memory_space<smem>>
    %99 = vector.broadcast %2 : f32 to vector<8x128xf32>
    %100 = arith.mulf %92, %99 : vector<8x128xf32>
    %101 = vector.broadcast %98 : f32 to vector<8x128xf32>
    %102 = arith.addf %101, %100 : vector<8x128xf32>
    %c22 = arith.constant 22 : index
    %103 = memref.load %arg1[%c22] : memref<48xf32, #tpu.memory_space<smem>>
    %104 = vector.broadcast %103 : f32 to vector<8x128xf32>
    %105 = arith.mulf %104, %88 : vector<8x128xf32>
    %c26 = arith.constant 26 : index
    %106 = memref.load %arg1[%c26] : memref<48xf32, #tpu.memory_space<smem>>
    %107 = vector.broadcast %106 : f32 to vector<8x128xf32>
    %108 = arith.mulf %107, %92 : vector<8x128xf32>
    %109 = arith.addf %105, %108 : vector<8x128xf32>
    %c30 = arith.constant 30 : index
    %110 = memref.load %arg1[%c30] : memref<48xf32, #tpu.memory_space<smem>>
    %111 = vector.broadcast %110 : f32 to vector<8x128xf32>
    %112 = arith.addf %109, %111 : vector<8x128xf32>
    %cst_7 = arith.constant 0.000000e+00 : f32
    %113 = vector.broadcast %cst_7 : f32 to vector<8x128xf32>
    %114 = arith.maximumf %112, %113 : vector<8x128xf32>
    %c34 = arith.constant 34 : index
    %115 = memref.load %arg1[%c34] : memref<48xf32, #tpu.memory_space<smem>>
    %116 = vector.broadcast %115 : f32 to vector<8x128xf32>
    %117 = arith.mulf %116, %114 : vector<8x128xf32>
    %118 = arith.addf %97, %117 : vector<8x128xf32>
    %c35 = arith.constant 35 : index
    %119 = memref.load %arg1[%c35] : memref<48xf32, #tpu.memory_space<smem>>
    %120 = vector.broadcast %119 : f32 to vector<8x128xf32>
    %121 = arith.mulf %120, %114 : vector<8x128xf32>
    %122 = arith.addf %102, %121 : vector<8x128xf32>
    %c23 = arith.constant 23 : index
    %123 = memref.load %arg1[%c23] : memref<48xf32, #tpu.memory_space<smem>>
    %124 = vector.broadcast %123 : f32 to vector<8x128xf32>
    %125 = arith.mulf %124, %88 : vector<8x128xf32>
    %c27 = arith.constant 27 : index
    %126 = memref.load %arg1[%c27] : memref<48xf32, #tpu.memory_space<smem>>
    %127 = vector.broadcast %126 : f32 to vector<8x128xf32>
    %128 = arith.mulf %127, %92 : vector<8x128xf32>
    %129 = arith.addf %125, %128 : vector<8x128xf32>
    %c31 = arith.constant 31 : index
    %130 = memref.load %arg1[%c31] : memref<48xf32, #tpu.memory_space<smem>>
    %131 = vector.broadcast %130 : f32 to vector<8x128xf32>
    %132 = arith.addf %129, %131 : vector<8x128xf32>
    %cst_8 = arith.constant 0.000000e+00 : f32
    %133 = vector.broadcast %cst_8 : f32 to vector<8x128xf32>
    %134 = arith.maximumf %132, %133 : vector<8x128xf32>
    %c36 = arith.constant 36 : index
    %135 = memref.load %arg1[%c36] : memref<48xf32, #tpu.memory_space<smem>>
    %136 = vector.broadcast %135 : f32 to vector<8x128xf32>
    %137 = arith.mulf %136, %134 : vector<8x128xf32>
    %138 = arith.addf %118, %137 : vector<8x128xf32>
    %c37 = arith.constant 37 : index
    %139 = memref.load %arg1[%c37] : memref<48xf32, #tpu.memory_space<smem>>
    %140 = vector.broadcast %139 : f32 to vector<8x128xf32>
    %141 = arith.mulf %140, %134 : vector<8x128xf32>
    %142 = arith.addf %122, %141 : vector<8x128xf32>
    %c24 = arith.constant 24 : index
    %143 = memref.load %arg1[%c24] : memref<48xf32, #tpu.memory_space<smem>>
    %144 = vector.broadcast %143 : f32 to vector<8x128xf32>
    %145 = arith.mulf %144, %88 : vector<8x128xf32>
    %c28 = arith.constant 28 : index
    %146 = memref.load %arg1[%c28] : memref<48xf32, #tpu.memory_space<smem>>
    %147 = vector.broadcast %146 : f32 to vector<8x128xf32>
    %148 = arith.mulf %147, %92 : vector<8x128xf32>
    %149 = arith.addf %145, %148 : vector<8x128xf32>
    %c32 = arith.constant 32 : index
    %150 = memref.load %arg1[%c32] : memref<48xf32, #tpu.memory_space<smem>>
    %151 = vector.broadcast %150 : f32 to vector<8x128xf32>
    %152 = arith.addf %149, %151 : vector<8x128xf32>
    %cst_9 = arith.constant 0.000000e+00 : f32
    %153 = vector.broadcast %cst_9 : f32 to vector<8x128xf32>
    %154 = arith.maximumf %152, %153 : vector<8x128xf32>
    %c38 = arith.constant 38 : index
    %155 = memref.load %arg1[%c38] : memref<48xf32, #tpu.memory_space<smem>>
    %156 = vector.broadcast %155 : f32 to vector<8x128xf32>
    %157 = arith.mulf %156, %154 : vector<8x128xf32>
    %158 = arith.addf %138, %157 : vector<8x128xf32>
    %c39 = arith.constant 39 : index
    %159 = memref.load %arg1[%c39] : memref<48xf32, #tpu.memory_space<smem>>
    %160 = vector.broadcast %159 : f32 to vector<8x128xf32>
    %161 = arith.mulf %160, %154 : vector<8x128xf32>
    %162 = arith.addf %142, %161 : vector<8x128xf32>
    %c25 = arith.constant 25 : index
    %163 = memref.load %arg1[%c25] : memref<48xf32, #tpu.memory_space<smem>>
    %164 = vector.broadcast %163 : f32 to vector<8x128xf32>
    %165 = arith.mulf %164, %88 : vector<8x128xf32>
    %c29 = arith.constant 29 : index
    %166 = memref.load %arg1[%c29] : memref<48xf32, #tpu.memory_space<smem>>
    %167 = vector.broadcast %166 : f32 to vector<8x128xf32>
    %168 = arith.mulf %167, %92 : vector<8x128xf32>
    %169 = arith.addf %165, %168 : vector<8x128xf32>
    %c33 = arith.constant 33 : index
    %170 = memref.load %arg1[%c33] : memref<48xf32, #tpu.memory_space<smem>>
    %171 = vector.broadcast %170 : f32 to vector<8x128xf32>
    %172 = arith.addf %169, %171 : vector<8x128xf32>
    %cst_10 = arith.constant 0.000000e+00 : f32
    %173 = vector.broadcast %cst_10 : f32 to vector<8x128xf32>
    %174 = arith.maximumf %172, %173 : vector<8x128xf32>
    %c40 = arith.constant 40 : index
    %175 = memref.load %arg1[%c40] : memref<48xf32, #tpu.memory_space<smem>>
    %176 = vector.broadcast %175 : f32 to vector<8x128xf32>
    %177 = arith.mulf %176, %174 : vector<8x128xf32>
    %178 = arith.addf %158, %177 : vector<8x128xf32>
    %c41 = arith.constant 41 : index
    %179 = memref.load %arg1[%c41] : memref<48xf32, #tpu.memory_space<smem>>
    %180 = vector.broadcast %179 : f32 to vector<8x128xf32>
    %181 = arith.mulf %180, %174 : vector<8x128xf32>
    %182 = arith.addf %162, %181 : vector<8x128xf32>
    %c44 = arith.constant 44 : index
    %183 = memref.load %arg1[%c44] : memref<48xf32, #tpu.memory_space<smem>>
    %184 = vector.broadcast %183 : f32 to vector<8x128xf32>
    %185 = arith.mulf %184, %178 : vector<8x128xf32>
    %c45 = arith.constant 45 : index
    %186 = memref.load %arg1[%c45] : memref<48xf32, #tpu.memory_space<smem>>
    %187 = vector.broadcast %186 : f32 to vector<8x128xf32>
    %188 = arith.mulf %187, %182 : vector<8x128xf32>
    %189 = arith.addf %185, %188 : vector<8x128xf32>
    %c46 = arith.constant 46 : index
    %190 = memref.load %arg1[%c46] : memref<48xf32, #tpu.memory_space<smem>>
    %191 = vector.broadcast %190 : f32 to vector<8x128xf32>
    %192 = arith.addf %189, %191 : vector<8x128xf32>
    %193 = arith.negf %192 : vector<8x128xf32>
    %194 = math.exp %193 : vector<8x128xf32>
    %cst_11 = arith.constant 1.000000e+00 : f32
    %195 = vector.broadcast %cst_11 : f32 to vector<8x128xf32>
    %196 = arith.addf %195, %194 : vector<8x128xf32>
    %197 = arith.divf %195, %196 : vector<8x128xf32>
    %c0_12 = arith.constant 0 : index
    %c0_13 = arith.constant 0 : index
    %198 = vector.load %arg4[%c0_12, %c0_13] : memref<8x128xf32, #tpu.memory_space<vmem>>, vector<8x128xf32>
    tpu.vector_store %arg4[%c0_12, %c0_13], %197 {strides = array<i32>} : memref<8x128xf32, #tpu.memory_space<vmem>>, vector<8x128xf32>,
    return
  }
  func.func @transform_0(%arg0: i32) -> i32 {
    %c0_i32 = arith.constant 0 : i32
    %c0_i32_0 = arith.constant 0 : i32
    return %c0_i32 : i32
  }
  func.func @transform_1(%arg0: i32) -> (i32, i32) {
    %c0_i32 = arith.constant 0 : i32
    %c0_i32_0 = arith.constant 0 : i32
    return %arg0, %c0_i32 : i32, i32
  }
  func.func @transform_2(%arg0: i32) -> (i32, i32) {
    %c0_i32 = arith.constant 0 : i32
    %c0_i32_0 = arith.constant 0 : i32
    return %arg0, %c0_i32 : i32, i32
  }
  func.func @transform_3(%arg0: i32) -> (i32, i32) {
    %c0_i32 = arith.constant 0 : i32
    %c0_i32_0 = arith.constant 0 : i32
    return %arg0, %c0_i32 : i32, i32
  }
}

</mosaic_0001>

<bundles_post_ra>
// kernel: residualv2_forward.1
= control target key start
LH: loop header
LB: loop body
LE: loop exit
PB: predicated region body
PF: predicated region fallthrough
CT: control target
= control target key end

     0   :  { %8 = vsyncpa [#allocation4], 0  ;;  %s909_s0 = inlined_call_operand.vmem [shape: f32[48], index: 0, kind: input, shape index: {}]   ;;  %s910_s1 = inlined_call_operand.vmem [shape: f32[16,128], index: 1, kind: input, shape index: {}]   ;;  %s911_s2 = inlined_call_operand.vmem [shape: f32[16,128], index: 2, kind: input, shape index: {}]   ;;  %s912_s3 = inlined_call_operand.hbm [shape: f32[16,128], index: 3, kind: output, shape index: {}]  }
   0x1   :  { %9 = vsyncpa [#allocation3], 0 }
   0x2   :  { %11 = vsyncpa [#allocation3 + $0x1], 0  ;;  %s717_s12 = smov 0   ;;  %s719_s13 = smov 0  }
   0x3   :  { %s721_s14 = smov 0   ;;  %s723_s15 = smov 0  }
   0x4 LB: > { %s738_s16 = sadd.s32 4294967295, %s694_s15   ;;  %s498_s17 = sadd.s32 4294967294, %s694_s15   ;;  %s694_s15 = sphi %s723_s15, %s918_s15   ;;  %s690_s14 = sphi %s721_s14, %s917_s14   ;;  %s686_s13 = sphi %s719_s13, %s916_s13   ;;  %s682_s12 = sphi %s717_s12, %s915_s12  }
   0x5   : > { %s742_s18 = sadd.s32 1, %s694_s15   ;;  %s97_s19 = sadd.s32 1, %s690_s14 }
   0x6   : > { %s94_s20 = ssub.s32 %s694_s15, %s742_s18  ;;  %p107_p0 = scmp.ne.s32.totalorder %s690_s14, %s686_s13 }
   0x7   : > { %p95_p1 = scmp.eq.s32.totalorder %s94_s20, 0  ;;  %p108_p2 = scmp.eq.s32.totalorder %s738_s16, 1 }
   0x8   : > { %p113_p3 = scmp.ne.s32.totalorder %s686_s13, %s682_s12  ;;  %p114_p4 = scmp.eq.s32.totalorder %s498_s17, 1 }
   0x9   : > { %s753_s21 = scalar_select %p95_p1, %s690_s14, %s97_s19  }
   0xa   : > { %p755_p5 = por %p108_p2, %p107_p0  ;;  %p759_p6 = por %p114_p4, %p113_p3 }
   0xb   : > { %p499_p7 = scmp.ge.s32.totalorder %s694_s15, 1  ;;  %p121_p8 = scmp.lt.s32.totalorder %s694_s15, 3 }
   0xc   : > { %p573_p9 = scmp.eq.s32.totalorder %s738_s16, 0  ;;  %s133_s26 = sshll.u32 %s909_s0, 4  ;;  %s134_s26 = int_to_ptr.vmem [resolvable:$true] %s133_s26 }
   0xd   : > { %p122_p10 = pnand %p499_p7, %p121_p8  ;;  %s696_s27 = smov [#allocation2]  }
   0xf   : > { %p565_p11 = pneg %p122_p10  ;;  %160 = sbr.rel (%p122_p10) target bundleno = 122 (0x7a), region = 32 }
  0x11   : > { %p566_p12 = pnand %p573_p9, %p565_p11 }
  0x13   : > { %568 = dma.vmem_to_smem (!%p566_p12), %s134_s26, 16, %s696_s27, [#allocation4]  }
  0x14   : > { %673 = dma.done.wait (%p573_p9), [#allocation4], 16  }
  0x15   : > { %675 = vsyncadd (%p573_p9), [#allocation4], 4294967280 }
  0x16   : > { %167 = sfence }
  0x17   : > { %p189_p13 = scmp.lt.s32.totalorder %s738_s16, 1  ;;  %s507_s28 = sld [smem:[#allocation2 + $0x2f]] }
  0x18   : > { %s771_s30 = sld [smem:[#allocation2 + $0x14]] }
  0x19   : > { %s190_s29 = scalar_select %p189_p13, %s738_s16, 1 }
  0x1a   : > { %s209_s5 = sld [smem:[#allocation2]] }
  0x1b   : > { %s505_s4 = sshll.u32 %s190_s29, 3  ;;  %s776_s9 = sld [smem:[#allocation2 + $0x15]] }
  0x1c   : > { %s192_s8 = scalar_lea.vmem %s910_s1, %s505_s4  ;;  %s510_s10 = sld [smem:[#allocation2 + $0x4]] }
  0x1d   : > { %s196_s19 = scalar_lea.vmem %s911_s2, %s505_s4  ;;  %s511_s20 = sld [smem:[#allocation2 + $0x8]]  ;;  %v197_v0 = vld [vmem:[%s192_s8] sm:$0xff]  ;;  %v789_v5 = vstv %s507_s28 }
  0x1e   : > { %s781_s24 = sld [smem:[#allocation2 + $0xc]]  ;;  %v785_v1 = vld [vmem:[%s196_s19] sm:$0xff]  ;;  %v202_v9 = vmul.f32 %v789_v5, %v197_v0  ;;  %v203_v15 = vstv %s771_s30 }
  0x1f   : > { %s783_s25 = sld [smem:[#allocation2 + $0xd]]  ;;  %v206_v11 = vmul.f32 %v789_v5, %v785_v1 }
  0x20   : > { %v210_v2 = vstv %s209_s5  ;;  %s514_s26 = sld [smem:[#allocation2 + $0x1]]  ;;  %v204_v23 = vadd.f32 %v203_v15, %v202_v9 }
  0x21   : > { %v211_v3 = vmul.f32 %v210_v2, %v197_v0  ;;  %s515_s27 = sld [smem:[#allocation2 + $0x5]]  ;;  %v207_v16 = vstv %s776_s9 }
  0x22   : > { %v213_v4 = vstv %s510_s10  ;;  %s787_s29 = sld [smem:[#allocation2 + $0x9]]  ;;  %v208_v24 = vadd.f32 %v207_v16, %v206_v11 }
  0x23   : > { %v214_v6 = vmul.f32 %v213_v4, %v785_v1  ;;  %s792_s4 = sld [smem:[#allocation2 + $0xe]]  ;;  %v217_v7 = vstv %s511_s20 }
  0x24   : > { %s794_s6 = sld [smem:[#allocation2 + $0xf]]  ;;  %v221_v17 = vstv %s781_s24 }
  0x25   : > { %v215_v8 = vadd.f32 %v214_v6, %v211_v3  ;;  %s519_s5 = sld [smem:[#allocation2 + $0x2]]  ;;  %v225_v20 = vstv %s783_s25 }
  0x26   : > { %v229_v10 = vstv %s514_s26  ;;  %s520_s7 = sld [smem:[#allocation2 + $0x6]] }
  0x27   : > { %v218_v12 = vadd.f32 %v217_v7, %v215_v8  ;;  %v230_v13 = vmul.f32 %v229_v10, %v197_v0  ;;  %v232_v14 = vstv %s515_s27  ;;  %s799_s28 = sld [smem:[#allocation2 + $0xa]] }
  0x28   : > { %v233_v18 = vmul.f32 %v232_v14, %v785_v1  ;;  %s805_s8 = sld [smem:[#allocation2 + $0x10]]  ;;  %v236_v21 = vstv %s787_s29 }
  0x29   : > { %v219_v19 = vmax.f32 %v218_v12, 0.0  ;;  %s809_s10 = sld [smem:[#allocation2 + $0x11]]  ;;  %v240_v31 = vstv %s792_s4 }
  0x2a   : > { %v234_v22 = vadd.f32 %v233_v18, %v230_v13  ;;  %s524_s11 = sld [smem:[#allocation2 + $0x3]]  ;;  %v244_v32 = vstv %s794_s6 }
  0x2b   : > { %v222_v25 = vmul.f32 %v221_v17, %v219_v19  ;;  %v248_v26 = vstv %s519_s5  ;;  %s525_s30 = sld [smem:[#allocation2 + $0x7]]  ;;  %v226_v27 = vmul.f32 %v225_v20, %v219_v19 }
  0x2c   : > { %v237_v28 = vadd.f32 %v236_v21, %v234_v22  ;;  %v249_v29 = vmul.f32 %v248_v26, %v197_v0  ;;  %v251_v30 = vstv %s520_s7  ;;  %s811_s9 = sld [smem:[#allocation2 + $0xb]] }
  0x2d   : > { %v252_v33 = vmul.f32 %v251_v30, %v785_v1  ;;  %s816_s17 = sld [smem:[#allocation2 + $0x12]]  ;;  %v255_v35 = vstv %s799_s28  ;;  %v223_v36 = vadd.f32 %v222_v25, %v204_v23  ;;  %v227_v38 = vadd.f32 %v226_v27, %v208_v24 }
  0x2e   : > { %v238_v34 = vmax.f32 %v237_v28, 0.0  ;;  %s819_s19 = sld [smem:[#allocation2 + $0x13]]  ;;  %v259_v45 = vstv %s805_s8 }
  0x2f   : > { %v253_v37 = vadd.f32 %v252_v33, %v249_v29  ;;  %s821_s20 = sld [smem:[#allocation2 + $0x2a]]  ;;  %v263_v46 = vstv %s809_s10 }
  0x30   : > { %v241_v39 = vmul.f32 %v240_v31, %v238_v34  ;;  %v245_v40 = vmul.f32 %v244_v32, %v238_v34  ;;  %v267_v41 = vstv %s524_s11  ;;  %s823_s24 = sld [smem:[#allocation2 + $0x2b]] }
  0x31   : > { %v256_v42 = vadd.f32 %v255_v35, %v253_v37  ;;  %v268_v43 = vmul.f32 %v267_v41, %v197_v0  ;;  %v270_v44 = vstv %s525_s30  ;;  %s825_s25 = sld [smem:[#allocation2 + $0x16]] }
  0x32   : > { %v271_v47 = vmul.f32 %v270_v44, %v785_v1  ;;  %s830_s26 = sld [smem:[#allocation2 + $0x1a]]  ;;  %v274_v49 = vstv %s811_s9  ;;  %v242_v50 = vadd.f32 %v241_v39, %v223_v36  ;;  %v246_v51 = vadd.f32 %v245_v40, %v227_v38 }
  0x33   : > { %v257_v48 = vmax.f32 %v256_v42, 0.0  ;;  %s833_s27 = sld [smem:[#allocation2 + $0x1e]]  ;;  %v278_v56 = vstv %s816_s17 }
  0x34   : > { %v272_v52 = vadd.f32 %v271_v47, %v268_v43  ;;  %s835_s29 = sld [smem:[#allocation2 + $0x22]]  ;;  %v282_v57 = vstv %s819_s19 }
  0x35   : > { %v260_v53 = vmul.f32 %v259_v45, %v257_v48  ;;  %v264_v54 = vmul.f32 %v263_v46, %v257_v48  ;;  %s837_s4 = sld [smem:[#allocation2 + $0x23]]  ;;  %v287_v12 = vstv %s821_s20 }
  0x36   : > { %v275_v55 = vadd.f32 %v274_v49, %v272_v52  ;;  %s536_s6 = sld [smem:[#allocation2 + $0x17]]  ;;  %v291_v16 = vstv %s823_s24 }
  0x37   : > { %s537_s5 = sld [smem:[#allocation2 + $0x1b]]  ;;  %v261_v58 = vadd.f32 %v260_v53, %v242_v50  ;;  %v265_v59 = vadd.f32 %v264_v54, %v246_v51  ;;  %v294_v63 = vstv %s825_s25 }
  0x38   : > { %v276_v60 = vmax.f32 %v275_v55, 0.0  ;;  %s841_s7 = sld [smem:[#allocation2 + $0x1f]]  ;;  %v297_v0 = vstv %s830_s26 }
  0x39   : > { %s843_s28 = sld [smem:[#allocation2 + $0x24]]  ;;  %v301_v9 = vstv %s833_s27 }
  0x3a   : > { %v279_v61 = vmul.f32 %v278_v56, %v276_v60  ;;  %v283_v62 = vmul.f32 %v282_v57, %v276_v60  ;;  %s845_s8 = sld [smem:[#allocation2 + $0x25]]  ;;  %v305_v17 = vstv %s835_s29 }
  0x3b   : > { %s541_s10 = sld [smem:[#allocation2 + $0x18]]  ;;  %v309_v21 = vstv %s837_s4 }
  0x3c   : > { %v280_v1 = vadd.f32 %v279_v61, %v261_v58  ;;  %v284_v2 = vadd.f32 %v283_v62, %v265_v59  ;;  %v313_v3 = vstv %s536_s6  ;;  %s542_s11 = sld [smem:[#allocation2 + $0x1c]]  ;;  %s186_s6 = sand.u32 1, %s686_s13  }
  0x3d   : > { %v316_v4 = vstv %s537_s5  ;;  %s849_s30 = sld [smem:[#allocation2 + $0x20]]  ;;  %s504_s5 = sshll.u32 %s186_s6, 3 }
  0x3e   : > { %v295_v6 = vmul.f32 %v294_v63, %v280_v1  ;;  %v298_v7 = vmul.f32 %v297_v0, %v284_v2  ;;  %s851_s9 = sld [smem:[#allocation2 + $0x26]]  ;;  %v286_v8 = vmul.f32 %v280_v1, %v789_v5  ;;  %v314_v10 = vmul.f32 %v313_v3, %v280_v1 }
  0x3f   : > { %v317_v11 = vmul.f32 %v316_v4, %v284_v2  ;;  %s855_s17 = sld [smem:[#allocation2 + $0x27]]  ;;  %v290_v13 = vmul.f32 %v284_v2, %v789_v5  ;;  %v320_v15 = vstv %s841_s7  ;;  %v324_v25 = vstv %s843_s28  ;;  %s556_s7 = sshll.u32 %s738_s16, 3 }
  0x40   : > { %v299_v14 = vadd.f32 %v298_v7, %v295_v6  ;;  %s546_s19 = sld [smem:[#allocation2 + $0x19]]  ;;  %v288_v5 = vadd.f32 %v287_v12, %v286_v8  ;;  %v328_v29 = vstv %s845_s8  ;;  %s400_s16 = scalar_lea.sflag [#allocation3], %s186_s6 }
  0x41   : > { %v318_v18 = vadd.f32 %v317_v11, %v314_v10  ;;  %v332_v19 = vstv %s541_s10  ;;  %s862_s25 = sld [smem:[#allocation2 + $0x1d]]  ;;  %v292_v27 = vadd.f32 %v291_v16, %v290_v13  ;;  %s410_s10 = scalar_lea.hbm %s912_s3, %s556_s7 }
  0x42   : > { %v302_v20 = vadd.f32 %v301_v9, %v299_v14  ;;  %v333_v22 = vmul.f32 %v332_v19, %v280_v1  ;;  %v335_v23 = vstv %s542_s11  ;;  %s865_s20 = sld [smem:[#allocation2 + $0x21]]  ;;  %s188_s11 = scalar_lea.vmem [#allocation5], %s504_s5 }
  0x43   : > { %v321_v24 = vadd.f32 %v320_v15, %v318_v18  ;;  %v336_v26 = vmul.f32 %v335_v23, %v284_v2  ;;  %v339_v30 = vstv %s849_s30  ;;  %s870_s24 = sld [smem:[#allocation2 + $0x28]]  ;;  %s412_s30 = sshll.u32 %s188_s11, 4  ;;  %s413_s30 = int_to_ptr.vmem [resolvable:$true] %s412_s30 }
  0x44   : > { %v303_v28 = vmax.f32 %v302_v20, 0.0  ;;  %v343_v35 = vstv %s851_s9  ;;  %s550_s26 = sld [smem:[#allocation2 + $0x29]]  ;;  %s414_s9 = sshll.u32 %s410_s10, 4  ;;  %s415_s9 = int_to_ptr.hbm [resolvable:$true] %s414_s9 }
  0x45   : > { %v322_v31 = vmax.f32 %v321_v24, 0.0  ;;  %v337_v32 = vadd.f32 %v336_v26, %v333_v22  ;;  %v347_v43 = vstv %s855_s17  ;;  %s551_s27 = sld [smem:[#allocation2 + $0x2c]]  ;;  %s642_s17 = sshra.s32 %s415_s9, 4  ;;  %s643_s17 = int_to_ptr.hbm [resolvable:$true] %s642_s17 }
  0x46   : > { %v306_v33 = vmul.f32 %v305_v17, %v303_v28  ;;  %v310_v34 = vmul.f32 %v309_v21, %v303_v28  ;;  %v351_v36 = vstv %s546_s19  ;;  %s552_s29 = sld [smem:[#allocation2 + $0x2d]]  ;;  %s644_s19 = scalar_lea.hbm %s643_s17, 8 }
  0x47   : > { %v325_v37 = vmul.f32 %v324_v25, %v322_v31  ;;  %v329_v38 = vmul.f32 %v328_v29, %v322_v31  ;;  %v340_v39 = vadd.f32 %v339_v30, %v337_v32  ;;  %v352_v40 = vmul.f32 %v351_v36, %v280_v1  ;;  %s553_s4 = sld [smem:[#allocation2 + $0x2e]]  ;;  %p645_p0 = scmp.ne.s32.totalorder %s643_s17, %s644_s19 }
  0x48   : > { %v307_v41 = vadd.f32 %v306_v33, %v288_v5  ;;  %v311_v42 = vadd.f32 %v310_v34, %v292_v27  ;;  %v354_v44 = vstv %s862_s25  ;;  %v358_v48 = vstv %s865_s20  ;;  %p649_p3 = scmp.lt.s32.totalorder %s643_s17, %s912_s3 }
  0x49   : > { %v341_v45 = vmax.f32 %v340_v39, 0.0  ;;  %v355_v46 = vmul.f32 %v354_v44, %v284_v2  ;;  %v362_v54 = vstv %s870_s24  ;;  %p646_p1 = pnand %p645_p0, %p755_p5  ;;  %s648_s24 = scalar_lea.hbm %s912_s3, 16 }
  0x4a   : > { %v326_v47 = vadd.f32 %v325_v37, %v307_v41  ;;  %v330_v49 = vadd.f32 %v329_v38, %v311_v42  ;;  %v366_v55 = vstv %s550_s26  ;;  %p650_p4 = scmp.lt.s32.totalorder %s648_s24, %s644_s19 }
  0x4b   : > { %v344_v50 = vmul.f32 %v343_v35, %v341_v45  ;;  %v348_v51 = vmul.f32 %v347_v43, %v341_v45  ;;  %v356_v52 = vadd.f32 %v355_v46, %v352_v40  ;;  %v370_v61 = vstv %s551_s27  ;;  %p647_p2 = pneg %p646_p1 }
  0x4c   : > { %v373_v62 = vstv %s552_s29  ;;  %p651_p7 = por %p650_p4, %p649_p3 }
  0x4d   : > { %v359_v53 = vadd.f32 %v358_v48, %v356_v52  ;;  %v345_v56 = vadd.f32 %v344_v50, %v326_v47  ;;  %v349_v57 = vadd.f32 %v348_v51, %v330_v49  ;;  %v377_v3 = vstv %s553_s4 }
  0x4e   : > { %p652_p8 = pnand %p651_p7, %p647_p2 }
  0x4f   : > { %v360_v58 = vmax.f32 %v359_v53, 0.0 }
  0x51   : > { %v363_v59 = vmul.f32 %v362_v54, %v360_v58  ;;  %v367_v60 = vmul.f32 %v366_v55, %v360_v58 }
  0x53   : > { %v364_v63 = vadd.f32 %v363_v59, %v345_v56  ;;  %v368_v0 = vadd.f32 %v367_v60, %v349_v57 }
  0x55   : > { %v371_v1 = vmul.f32 %v370_v61, %v364_v63  ;;  %v374_v2 = vmul.f32 %v373_v62, %v368_v0 }
  0x57   : > { %v375_v4 = vadd.f32 %v374_v2, %v371_v1 }
  0x59   : > { %v378_v6 = vadd.f32 %v377_v3, %v375_v4 }
  0x5b   : > { %v554_v7 = vmul.f32 -1.442695, %v378_v6 }
  0x5d   : > { %609 = vpow2.f32 %v554_v7 }
  0x63   : > { %v610_v8 = vpop.eup %609 }
  0x64   : > { %v382_v9 = vadd.f32 1.0, %v610_v8 }
  0x66   : > { %611 = vrcp.f32 %v382_v9  ;;  %v394_v12 = vand.u32 2147483648, %v382_v9  ;;  %vm388_vm0 = vweird.f32 %v382_v9  ;;  %v392_v14 = vand.u32 2147483647, %v382_v9 }
  0x68   : > { %v395_v16 = vor.u32 1.1754944e-38, %v394_v12  ;;  %vm393_vm3 = vcmp.eq.f32.partialorder %v392_v14, 8.507059e+37 }
  0x6c   : > { %v612_v10 = vpop.eup %611 }
  0x6d   : > { %v384_v11 = vmul.f32 %v612_v10, %v382_v9  ;;  %vm389_vm1 = vweird.f32 %v612_v10 }
  0x6e   : > { %vm390_vm2 = vmor %vm388_vm0, %vm389_vm1 }
  0x6f   : > { %v385_v13 = vsub.f32 1.0, %v384_v11 }
  0x71   : > { %v386_v15 = vmul.f32 %v612_v10, %v385_v13 }
  0x73   : > { %v387_v17 = vadd.f32 %v612_v10, %v386_v15 }
  0x75   : > { %v391_v18 = vsel %vm390_vm2, %v612_v10, %v387_v17 }
  0x76   : > { %v396_v19 = vsel %vm393_vm3, %v395_v16, %v391_v18 }
  0x77   : > { %398 = vst [vmem:[%s188_s11] sm:$0xff] %v396_v19 }
  0x78   : > { %655 = shalt.err (!%p652_p8)
}
  0x79   : > { %563 = dma.vmem_to_hbm [thread:$0]  (%p755_p5), %s413_s30, 128, %s415_s9, %s400_s16  }
  0x7a PF: > { %p575_p9 = scmp.ge.s32.totalorder %s694_s15, 2  ;;  %s426_s29 = sand.u32 1, %s682_s12  }
  0x7b   : > { %s427_s4 = scalar_lea.sflag [#allocation3], %s426_s29 }
  0x7c   : > { %p570_p10 = pnand %p575_p9, %p759_p6 }
  0x7e   : > { %p571_p11 = pneg %p570_p10 }
  0x80   : > { %677 = dma.done.wait (%p571_p11), %s427_s4, 128  }
  0x81   : > { %679 = vsyncadd (%p571_p11), %s427_s4, 4294967168  ;;  %p14_p12 = scmp.ge.s32.totalorder %s742_s18, 4   ;;  %s915_s12 = smov %s686_s13 }
  0x82   : > { %s916_s13 = smov %s690_s14  ;;  %s917_s14 = smov %s753_s21 }
  0x83   : > { %s918_s15 = smov %s742_s18  ;;  %16 = sbr.rel (!%p14_p12) target bundleno = 4 (0x4), region = 75 }
  0x88   :  { %433 = vsyncpa [#allocation3], 1 }
  0x89   :  { %435 = vsyncpa [#allocation3 + $0x1], 1 }
  0x8a   :  { %436 = vsyncpa [#allocation4], 1 }
  0x8b   :  { %438 = vsyncpa [#allocation4 + $0x1], 1 }

</bundles_post_ra>
